<compile_context>
chip_gen: v7x
topology: tpu7x:2x2x1
jax: 0.10.0
libtpu: 0.0.40
codegen_flags: <defaults>
</compile_context>

<pallas_src>
import jax
import jax.numpy as jnp
from jax import lax
from jax.experimental import pallas as pl
from jax.experimental.pallas import tpu as pltpu


def _banded_conv_weight(w_hwio, width, dtype):
    """Fold horizontal taps + horizontal zero-padding of a 3x3 'same' conv into
    one block-banded matrix per kernel row dy.

    Wt[dy][w_in*Cin + ci, w*Cout + co] = w_hwio[dy, w_in - w + 1, ci, co]
    when 0 <= w_in - w + 1 < 3 and 0 otherwise, so that
      out[h, w*Cout+co] = sum_dy (padded_rows[h+dy, :] @ Wt[dy])[w*Cout+co]
    equals the padding=1 cross-correlation (out-of-range columns contribute 0).
    """
    kh, kw, cin, cout = w_hwio.shape
    w_in = jnp.arange(width)[:, None]          # input column
    w_out = jnp.arange(width)[None, :]         # output column
    dx = w_in - w_out + (kw // 2)              # kernel tap index (pad = kw//2)
    valid = (dx >= 0) & (dx < kw)
    dx_c = jnp.clip(dx, 0, kw - 1)
    t = w_hwio[:, dx_c, :, :]                  # (kh, width, width, cin, cout)
    t = jnp.where(valid[None, :, :, None, None], t, 0.0)
    t = jnp.transpose(t, (0, 1, 3, 2, 4))      # (kh, width, cin, width, cout)
    return t.reshape(kh, width * cin, width * cout).astype(dtype)


def u_conv_forward(x_nchw, w1, b1, w2, b2, *, compute_dtype=jnp.bfloat16):
    """U_Conv forward (dense_Conv=[], outway='down').

    x: (N,Cin,H,W); w1: (3,3,Cin,Cout), w2: (3,3,Cout,Cout) (HWIO); b: (Cout,).
    compute_dtype is the MXU input dtype (accumulation is always f32).
    Returns (out_d, pooled) in NCHW like the PyTorch module.
    """
    N, Cin, H, W = x_nchw.shape
    Cout = w1.shape[-1]
    assert H % 2 == 0 and W % 2 == 0, "MaxPool2d(2,2) floor mode needs even H, W"
    Hh = H // 2
    WCi, WCo = W * Cin, W * Cout
    out_dtype = x_nchw.dtype

    # Lane-dense input rows: (N, H, W*Cin); lane index = w*Cin + ci.
    x_rows = jnp.transpose(x_nchw, (0, 2, 3, 1)).reshape(N, H, WCi)
    # Banded weights (compute dtype) + lane-replicated f32 biases, built once.
    wt1 = _banded_conv_weight(w1, W, compute_dtype)       # (3, W*Cin,  W*Cout)
    wt2 = _banded_conv_weight(w2, W, compute_dtype)       # (3, W*Cout, W*Cout)
    b1_row = jnp.tile(b1, W).reshape(1, WCo).astype(jnp.float32)
    b2_row = jnp.tile(b2, W).reshape(1, WCo).astype(jnp.float32)

    def kernel(x_ref, wt1_ref, b1_ref, wt2_ref, b2_ref,    # inputs
               od_ref, pm_ref,                             # outputs
               xpad_ref, ypad_ref):                        # VMEM scratch
        f32 = jnp.float32

        def conv3x3_relu(pad_ref, wt_ref, b_ref):
            # 3 banded MXU matmuls (one per kernel row), f32 accumulation.
            acc = jnp.zeros((H, WCo), f32)
            for dy in range(3):                            # static unroll
                lhs = pad_ref[pl.ds(dy, H), :].astype(compute_dtype)
                acc += jnp.dot(lhs, wt_ref[dy], preferred_element_type=f32)
            return jnp.maximum(acc + b_ref[...], 0.0)      # (H, W*Cout) f32

        # Zero ONLY the 1-px top/bottom halo rows.  Done every step (not under
        # pl.when(program_id==0)): each TensorCore has its own scratch, and
        # with the "parallel" batch axis a v7x core may never run step 0.
        # Interiors (rows 1..H) are fully overwritten below every step.
        xpad_ref[pl.ds(0, 1), :] = jnp.zeros((1, WCi), f32)
        xpad_ref[pl.ds(H + 1, 1), :] = jnp.zeros((1, WCi), f32)
        ypad_ref[pl.ds(0, 1), :] = jnp.zeros((1, WCo), f32)
        ypad_ref[pl.ds(H + 1, 1), :] = jnp.zeros((1, WCo), f32)

        # conv1 + ReLU (horizontal padding lives in the banded weight, so the
        # interior write is a plain full-lane-width sublane-offset store).
        xpad_ref[pl.ds(1, H), :] = x_ref[...].astype(f32)
        y1 = conv3x3_relu(xpad_ref, wt1_ref, b1_ref)

        # conv2 + ReLU -> out_d, written once, already lane-dense (H, W*Cout).
        ypad_ref[pl.ds(1, H), :] = y1
        y2 = conv3x3_relu(ypad_ref, wt2_ref, b2_ref)
        od_ref[...] = y2.astype(od_ref.dtype)

        # Fused 2x2/2 max-pool from the lane-dense out_d block:
        # vertical max of even/odd row pairs (strided sublane views of od_ref),
        # then horizontal max with the next Cout-wide lane block.
        even_rows = od_ref[pl.ds(0, Hh, stride=2), :]
        odd_rows = od_ref[pl.ds(1, Hh, stride=2), :]
        vmax = jnp.maximum(even_rows, odd_rows)            # (Hh, W*Cout)
        # jnp.roll with a static shift lowers to two lane slices + one concat
        # of this single (Hh, 128) tile (lane j picks up lane j+Cout); it is
        # the direction-explicit equivalent of pltpu.roll(vmax, -Cout, axis=1).
        nxt = jnp.roll(vmax, -Cout, axis=1)
        hmax = jnp.maximum(vmax, nxt)
        # Full-width (unmasked) store; the even Cout-blocks hold the pooled
        # values, odd blocks are redundant and dropped by the wrapper.
        pm_ref[...] = hmax.astype(pm_ref.dtype)

    out_d_rows, pool_rows = pl.pallas_call(
        kernel,
        out_shape=(jax.ShapeDtypeStruct((N, H, WCo), out_dtype),
                   jax.ShapeDtypeStruct((N, Hh, WCo), out_dtype)),
        grid_spec=pltpu.PrefetchScalarGridSpec(
            num_scalar_prefetch=0,
            grid=(N,),
            in_specs=[
                pl.BlockSpec((None, H, WCi), lambda n: (n, 0, 0)),
                pl.BlockSpec((3, WCi, WCo), lambda n: (0, 0, 0)),
                pl.BlockSpec((1, WCo), lambda n: (0, 0)),
                pl.BlockSpec((3, WCo, WCo), lambda n: (0, 0, 0)),
                pl.BlockSpec((1, WCo), lambda n: (0, 0)),
            ],
            out_specs=(
                pl.BlockSpec((None, H, WCo), lambda n: (n, 0, 0)),
                pl.BlockSpec((None, Hh, WCo), lambda n: (n, 0, 0)),
            ),
            scratch_shapes=[
                pltpu.VMEM((H + 2, WCi), jnp.float32),     # conv1 padded input
                pltpu.VMEM((H + 2, WCo), jnp.float32),     # conv2 padded input
            ],
        ),
        compiler_params=pltpu.CompilerParams(
            dimension_semantics=("parallel",)),            # even grid -> 2 v7x TCs
    )(x_rows, wt1, b1_row, wt2, b2_row)

    # Wrapper-side layout plumbing back to the PyTorch NCHW convention.
    out_d = jnp.transpose(out_d_rows.reshape(N, H, W, Cout), (0, 3, 1, 2))
    pooled = jnp.transpose(
        pool_rows.reshape(N, Hh, W, Cout)[:, :, 0::2, :], (0, 3, 1, 2))
    return out_d, pooled


# Pure-JAX reference for validation.
def _reference_forward(x_nchw, w1, b1, w2, b2):
    def conv(x, w, b):
        w_oihw = jnp.transpose(w, (3, 2, 0, 1))
        y = lax.conv_general_dilated(
            x, w_oihw, window_strides=(1, 1), padding="SAME",
            dimension_numbers=("NCHW", "OIHW", "NCHW"))
        return y + b.reshape(1, -1, 1, 1)

    y = jax.nn.relu(conv(x_nchw, w1, b1))
    y = jax.nn.relu(conv(y, w2, b2))
    N, C, H, W = y.shape
    pooled = y.reshape(N, C, H // 2, 2, W // 2, 2).max(axis=(3, 5))
    return y, pooled


if __name__ == "__main__":
    key = jax.random.PRNGKey(0)
    k1, k2, k3, k4, k5 = jax.random.split(key, 5)

    N, Cin, H, W = 2, 4, 16, 16
    Cout = 8  # output_channel

    x = jax.random.normal(k1, (N, Cin, H, W), jnp.float32)
    w1 = jax.random.normal(k2, (3, 3, Cin, Cout), jnp.float32) * 0.1
    b1 = jax.random.normal(k3, (Cout,), jnp.float32) * 0.1
    w2 = jax.random.normal(k4, (3, 3, Cout, Cout), jnp.float32) * 0.1
    b2 = jax.random.normal(k5, (Cout,), jnp.float32) * 0.1

    ref_d, ref_pool = _reference_forward(x, w1, b1, w2, b2)

    # Exact-algorithm check: f32 MXU inputs, tight tolerance.
    d32, p32 = u_conv_forward(x, w1, b1, w2, b2, compute_dtype=jnp.float32)
    jax.block_until_ready((d32, p32))
    assert d32.shape == (N, Cout, H, W)
    assert p32.shape == (N, Cout, H // 2, W // 2)
    assert jnp.allclose(d32, ref_d, atol=1e-4, rtol=1e-4)
    assert jnp.allclose(p32, ref_pool, atol=1e-4, rtol=1e-4)

    # Production default: bf16 MXU inputs, f32 accumulation -> looser tolerance
    # (expected bf16 rounding of inputs/weights, not a bug).
    d_bf, p_bf = u_conv_forward(x, w1, b1, w2, b2)
    jax.block_until_ready((d_bf, p_bf))
    assert jnp.allclose(d_bf, ref_d, atol=5e-2, rtol=5e-2)
    assert jnp.allclose(p_bf, ref_pool, atol=5e-2, rtol=5e-2)

    print("KERNEL_OK")
</pallas_src>

<mosaic_0001>
module attributes {stable_mosaic.version = 11 : i64} {
  func.func @kernel(%arg0: i32, %arg1: memref<1x16x64xf32, #tpu.memory_space<vmem>>, %arg2: memref<3x64x128xf32, #tpu.memory_space<vmem>>, %arg3: memref<1x128xf32, #tpu.memory_space<vmem>>, %arg4: memref<3x128x128xf32, #tpu.memory_space<vmem>>, %arg5: memref<1x128xf32, #tpu.memory_space<vmem>>, %arg6: memref<1x16x128xf32, #tpu.memory_space<vmem>>, %arg7: memref<1x8x128xf32, #tpu.memory_space<vmem>>, %arg8: memref<18x64xf32, #tpu.memory_space<vmem>>, %arg9: memref<18x128xf32, #tpu.memory_space<vmem>>) attributes {dimension_semantics = [#tpu.dimension_semantics<parallel>], iteration_bounds = array<i64: 2>, scalar_prefetch = 0 : i64, scratch_operands = 2 : i64, tpu.core_type = #tpu.core_type<tc>, window_params = [{transform_indices = @transform_0, window_bounds = array<i64: 1, 16, 64>}, {pipeline_mode = #tpu.pipeline_mode<synchronous>, transform_indices = @transform_1, window_bounds = array<i64: 3, 64, 128>}, {pipeline_mode = #tpu.pipeline_mode<synchronous>, transform_indices = @transform_2, window_bounds = array<i64: 1, 128>}, {pipeline_mode = #tpu.pipeline_mode<synchronous>, transform_indices = @transform_3, window_bounds = array<i64: 3, 128, 128>}, {pipeline_mode = #tpu.pipeline_mode<synchronous>, transform_indices = @transform_4, window_bounds = array<i64: 1, 128>}, {transform_indices = @transform_5, window_bounds = array<i64: 1, 16, 128>}, {transform_indices = @transform_6, window_bounds = array<i64: 1, 8, 128>}]} {
    %cst = arith.constant 0.000000e+00 : f32
    %0 = vector.broadcast %cst : f32 to vector<1x64xf32>
    %c0 = arith.constant 0 : index
    %c0_0 = arith.constant 0 : index
    %1 = vector.load %arg8[%c0, %c0_0] : memref<18x64xf32, #tpu.memory_space<vmem>>, vector<1x64xf32>
    tpu.vector_store %arg8[%c0, %c0_0], %0 {strides = array<i32>} : memref<18x64xf32, #tpu.memory_space<vmem>>, vector<1x64xf32>,
    %cst_1 = arith.constant 0.000000e+00 : f32
    %2 = vector.broadcast %cst_1 : f32 to vector<1x64xf32>
    %c17 = arith.constant 17 : index
    %c0_2 = arith.constant 0 : index
    %3 = vector.load %arg8[%c17, %c0_2] : memref<18x64xf32, #tpu.memory_space<vmem>>, vector<1x64xf32>
    tpu.vector_store %arg8[%c17, %c0_2], %2 {strides = array<i32>} : memref<18x64xf32, #tpu.memory_space<vmem>>, vector<1x64xf32>,
    %cst_3 = arith.constant 0.000000e+00 : f32
    %4 = vector.broadcast %cst_3 : f32 to vector<1x128xf32>
    %c0_4 = arith.constant 0 : index
    %c0_5 = arith.constant 0 : index
    %5 = vector.load %arg9[%c0_4, %c0_5] : memref<18x128xf32, #tpu.memory_space<vmem>>, vector<1x128xf32>
    tpu.vector_store %arg9[%c0_4, %c0_5], %4 {strides = array<i32>} : memref<18x128xf32, #tpu.memory_space<vmem>>, vector<1x128xf32>,
    %cst_6 = arith.constant 0.000000e+00 : f32
    %6 = vector.broadcast %cst_6 : f32 to vector<1x128xf32>
    %c17_7 = arith.constant 17 : index
    %c0_8 = arith.constant 0 : index
    %7 = vector.load %arg9[%c17_7, %c0_8] : memref<18x128xf32, #tpu.memory_space<vmem>>, vector<1x128xf32>
    tpu.vector_store %arg9[%c17_7, %c0_8], %6 {strides = array<i32>} : memref<18x128xf32, #tpu.memory_space<vmem>>, vector<1x128xf32>,
    %c0_9 = arith.constant 0 : index
    %c0_10 = arith.constant 0 : index
    %c0_11 = arith.constant 0 : index
    %8 = vector.load %arg1[%c0_9, %c0_10, %c0_11] : memref<1x16x64xf32, #tpu.memory_space<vmem>>, vector<1x16x64xf32>
    %9 = vector.shape_cast %8 : vector<1x16x64xf32> to vector<16x64xf32>
    %c1 = arith.constant 1 : index
    %c0_12 = arith.constant 0 : index
    %10 = vector.load %arg8[%c1, %c0_12] : memref<18x64xf32, #tpu.memory_space<vmem>>, vector<16x64xf32>
    tpu.vector_store %arg8[%c1, %c0_12], %9 {strides = array<i32>} : memref<18x64xf32, #tpu.memory_space<vmem>>, vector<16x64xf32>,
    %cst_13 = arith.constant 0.000000e+00 : f32
    %11 = vector.broadcast %cst_13 : f32 to vector<16x128xf32>
    %c0_14 = arith.constant 0 : index
    %c0_15 = arith.constant 0 : index
    %12 = vector.load %arg8[%c0_14, %c0_15] : memref<18x64xf32, #tpu.memory_space<vmem>>, vector<16x64xf32>
    %c0_16 = arith.constant 0 : index
    %c0_17 = arith.constant 0 : index
    %c0_18 = arith.constant 0 : index
    %13 = vector.load %arg2[%c0_16, %c0_17, %c0_18] : memref<3x64x128xf32, #tpu.memory_space<vmem>>, vector<1x64x128xf32>
    %14 = vector.shape_cast %13 : vector<1x64x128xf32> to vector<64x128xf32>
    %cst_19 = arith.constant dense<0.000000e+00> : vector<16x128xf32>
    %15 = tpu.matmul %12, %14, %cst_19 {dimension_numbers = #tpu.dot_dimension_numbers<[1], [0], [0], [1], [0, 0, 1, 1], [], []>} : vector<16x64xf32>, vector<64x128xf32>, vector<16x128xf32> -> vector<16x128xf32>
    %16 = arith.addf %11, %15 : vector<16x128xf32>
    %c1_20 = arith.constant 1 : index
    %c0_21 = arith.constant 0 : index
    %17 = vector.load %arg8[%c1_20, %c0_21] : memref<18x64xf32, #tpu.memory_space<vmem>>, vector<16x64xf32>
    %c1_22 = arith.constant 1 : index
    %c0_23 = arith.constant 0 : index
    %c0_24 = arith.constant 0 : index
    %18 = vector.load %arg2[%c1_22, %c0_23, %c0_24] : memref<3x64x128xf32, #tpu.memory_space<vmem>>, vector<1x64x128xf32>
    %19 = vector.shape_cast %18 : vector<1x64x128xf32> to vector<64x128xf32>
    %cst_25 = arith.constant dense<0.000000e+00> : vector<16x128xf32>
    %20 = tpu.matmul %17, %19, %cst_25 {dimension_numbers = #tpu.dot_dimension_numbers<[1], [0], [0], [1], [0, 0, 1, 1], [], []>} : vector<16x64xf32>, vector<64x128xf32>, vector<16x128xf32> -> vector<16x128xf32>
    %21 = arith.addf %16, %20 : vector<16x128xf32>
    %c2 = arith.constant 2 : index
    %c0_26 = arith.constant 0 : index
    %22 = vector.load %arg8[%c2, %c0_26] : memref<18x64xf32, #tpu.memory_space<vmem>>, vector<16x64xf32>
    %c2_27 = arith.constant 2 : index
    %c0_28 = arith.constant 0 : index
    %c0_29 = arith.constant 0 : index
    %23 = vector.load %arg2[%c2_27, %c0_28, %c0_29] : memref<3x64x128xf32, #tpu.memory_space<vmem>>, vector<1x64x128xf32>
    %24 = vector.shape_cast %23 : vector<1x64x128xf32> to vector<64x128xf32>
    %cst_30 = arith.constant dense<0.000000e+00> : vector<16x128xf32>
    %25 = tpu.matmul %22, %24, %cst_30 {dimension_numbers = #tpu.dot_dimension_numbers<[1], [0], [0], [1], [0, 0, 1, 1], [], []>} : vector<16x64xf32>, vector<64x128xf32>, vector<16x128xf32> -> vector<16x128xf32>
    %26 = arith.addf %21, %25 : vector<16x128xf32>
    %c0_31 = arith.constant 0 : index
    %c0_32 = arith.constant 0 : index
    %27 = vector.load %arg3[%c0_31, %c0_32] : memref<1x128xf32, #tpu.memory_space<vmem>>, vector<1x128xf32>
    %28 = vector.broadcast %27 : vector<1x128xf32> to vector<16x128xf32>
    %29 = arith.addf %26, %28 : vector<16x128xf32>
    %cst_33 = arith.constant 0.000000e+00 : f32
    %30 = vector.broadcast %cst_33 : f32 to vector<16x128xf32>
    %31 = arith.maximumf %29, %30 : vector<16x128xf32>
    %c1_34 = arith.constant 1 : index
    %c0_35 = arith.constant 0 : index
    %32 = vector.load %arg9[%c1_34, %c0_35] : memref<18x128xf32, #tpu.memory_space<vmem>>, vector<16x128xf32>
    tpu.vector_store %arg9[%c1_34, %c0_35], %31 {strides = array<i32>} : memref<18x128xf32, #tpu.memory_space<vmem>>, vector<16x128xf32>,
    %cst_36 = arith.constant 0.000000e+00 : f32
    %33 = vector.broadcast %cst_36 : f32 to vector<16x128xf32>
    %c0_37 = arith.constant 0 : index
    %c0_38 = arith.constant 0 : index
    %34 = vector.load %arg9[%c0_37, %c0_38] : memref<18x128xf32, #tpu.memory_space<vmem>>, vector<16x128xf32>
    %c0_39 = arith.constant 0 : index
    %c0_40 = arith.constant 0 : index
    %c0_41 = arith.constant 0 : index
    %35 = vector.load %arg4[%c0_39, %c0_40, %c0_41] : memref<3x128x128xf32, #tpu.memory_space<vmem>>, vector<1x128x128xf32>
    %36 = vector.shape_cast %35 : vector<1x128x128xf32> to vector<128x128xf32>
    %cst_42 = arith.constant dense<0.000000e+00> : vector<16x128xf32>
    %37 = tpu.matmul %34, %36, %cst_42 {dimension_numbers = #tpu.dot_dimension_numbers<[1], [0], [0], [1], [0, 0, 1, 1], [], []>} : vector<16x128xf32>, vector<128x128xf32>, vector<16x128xf32> -> vector<16x128xf32>
    %38 = arith.addf %33, %37 : vector<16x128xf32>
    %c1_43 = arith.constant 1 : index
    %c0_44 = arith.constant 0 : index
    %39 = vector.load %arg9[%c1_43, %c0_44] : memref<18x128xf32, #tpu.memory_space<vmem>>, vector<16x128xf32>
    %c1_45 = arith.constant 1 : index
    %c0_46 = arith.constant 0 : index
    %c0_47 = arith.constant 0 : index
    %40 = vector.load %arg4[%c1_45, %c0_46, %c0_47] : memref<3x128x128xf32, #tpu.memory_space<vmem>>, vector<1x128x128xf32>
    %41 = vector.shape_cast %40 : vector<1x128x128xf32> to vector<128x128xf32>
    %cst_48 = arith.constant dense<0.000000e+00> : vector<16x128xf32>
    %42 = tpu.matmul %39, %41, %cst_48 {dimension_numbers = #tpu.dot_dimension_numbers<[1], [0], [0], [1], [0, 0, 1, 1], [], []>} : vector<16x128xf32>, vector<128x128xf32>, vector<16x128xf32> -> vector<16x128xf32>
    %43 = arith.addf %38, %42 : vector<16x128xf32>
    %c2_49 = arith.constant 2 : index
    %c0_50 = arith.constant 0 : index
    %44 = vector.load %arg9[%c2_49, %c0_50] : memref<18x128xf32, #tpu.memory_space<vmem>>, vector<16x128xf32>
    %c2_51 = arith.constant 2 : index
    %c0_52 = arith.constant 0 : index
    %c0_53 = arith.constant 0 : index
    %45 = vector.load %arg4[%c2_51, %c0_52, %c0_53] : memref<3x128x128xf32, #tpu.memory_space<vmem>>, vector<1x128x128xf32>
    %46 = vector.shape_cast %45 : vector<1x128x128xf32> to vector<128x128xf32>
    %cst_54 = arith.constant dense<0.000000e+00> : vector<16x128xf32>
    %47 = tpu.matmul %44, %46, %cst_54 {dimension_numbers = #tpu.dot_dimension_numbers<[1], [0], [0], [1], [0, 0, 1, 1], [], []>} : vector<16x128xf32>, vector<128x128xf32>, vector<16x128xf32> -> vector<16x128xf32>
    %48 = arith.addf %43, %47 : vector<16x128xf32>
    %c0_55 = arith.constant 0 : index
    %c0_56 = arith.constant 0 : index
    %49 = vector.load %arg5[%c0_55, %c0_56] : memref<1x128xf32, #tpu.memory_space<vmem>>, vector<1x128xf32>
    %50 = vector.broadcast %49 : vector<1x128xf32> to vector<16x128xf32>
    %51 = arith.addf %48, %50 : vector<16x128xf32>
    %cst_57 = arith.constant 0.000000e+00 : f32
    %52 = vector.broadcast %cst_57 : f32 to vector<16x128xf32>
    %53 = arith.maximumf %51, %52 : vector<16x128xf32>
    %c0_58 = arith.constant 0 : index
    %c0_59 = arith.constant 0 : index
    %c0_60 = arith.constant 0 : index
    %54 = vector.load %arg6[%c0_58, %c0_59, %c0_60] : memref<1x16x128xf32, #tpu.memory_space<vmem>>, vector<1x16x128xf32>
    %55 = vector.shape_cast %54 : vector<1x16x128xf32> to vector<16x128xf32>
    %56 = vector.shape_cast %53 : vector<16x128xf32> to vector<1x16x128xf32>
    tpu.vector_store %arg6[%c0_58, %c0_59, %c0_60], %56 {strides = array<i32>} : memref<1x16x128xf32, #tpu.memory_space<vmem>>, vector<1x16x128xf32>,
    %c0_61 = arith.constant 0 : index
    %c0_62 = arith.constant 0 : index
    %c0_63 = arith.constant 0 : index
    %57 = tpu.strided_load %arg6[%c0_61, %c0_62, %c0_63] {strides = array<i32: 1, 2, 1>} : memref<1x16x128xf32, #tpu.memory_space<vmem>>, vector<1x8x128xf32>
    %58 = vector.shape_cast %57 : vector<1x8x128xf32> to vector<8x128xf32>
    %c0_64 = arith.constant 0 : index
    %c1_65 = arith.constant 1 : index
    %c0_66 = arith.constant 0 : index
    %59 = tpu.strided_load %arg6[%c0_64, %c1_65, %c0_66] {strides = array<i32: 1, 2, 1>} : memref<1x16x128xf32, #tpu.memory_space<vmem>>, vector<1x8x128xf32>
    %60 = vector.shape_cast %59 : vector<1x8x128xf32> to vector<8x128xf32>
    %61 = arith.maximumf %58, %60 : vector<8x128xf32>
    %62 = vector.extract_strided_slice %61 {offsets = [0, 8], sizes = [8, 120], strides = [1, 1]} : vector<8x128xf32> to vector<8x120xf32>
    %63 = vector.extract_strided_slice %61 {offsets = [0, 0], sizes = [8, 8], strides = [1, 1]} : vector<8x128xf32> to vector<8x8xf32>
    %64 = tpu.concatenate %62, %63 in 1 : vector<8x120xf32>, vector<8x8xf32> -> vector<8x128xf32>
    %65 = arith.maximumf %61, %64 : vector<8x128xf32>
    %c0_67 = arith.constant 0 : index
    %c0_68 = arith.constant 0 : index
    %c0_69 = arith.constant 0 : index
    %66 = vector.load %arg7[%c0_67, %c0_68, %c0_69] : memref<1x8x128xf32, #tpu.memory_space<vmem>>, vector<1x8x128xf32>
    %67 = vector.shape_cast %66 : vector<1x8x128xf32> to vector<8x128xf32>
    %68 = vector.shape_cast %65 : vector<8x128xf32> to vector<1x8x128xf32>
    tpu.vector_store %arg7[%c0_67, %c0_68, %c0_69], %68 {strides = array<i32>} : memref<1x8x128xf32, #tpu.memory_space<vmem>>, vector<1x8x128xf32>,
    return
  }
  func.func @transform_0(%arg0: i32) -> (i32, i32, i32) {
    %c0_i32 = arith.constant 0 : i32
    %c0_i32_0 = arith.constant 0 : i32
    %c0_i32_1 = arith.constant 0 : i32
    return %arg0, %c0_i32, %c0_i32_0 : i32, i32, i32
  }
  func.func @transform_1(%arg0: i32) -> (i32, i32, i32) {
    %c0_i32 = arith.constant 0 : i32
    %c0_i32_0 = arith.constant 0 : i32
    %c0_i32_1 = arith.constant 0 : i32
    %c0_i32_2 = arith.constant 0 : i32
    return %c0_i32, %c0_i32_0, %c0_i32_1 : i32, i32, i32
  }
  func.func @transform_2(%arg0: i32) -> (i32, i32) {
    %c0_i32 = arith.constant 0 : i32
    %c0_i32_0 = arith.constant 0 : i32
    %c0_i32_1 = arith.constant 0 : i32
    return %c0_i32, %c0_i32_0 : i32, i32
  }
  func.func @transform_3(%arg0: i32) -> (i32, i32, i32) {
    %c0_i32 = arith.constant 0 : i32
    %c0_i32_0 = arith.constant 0 : i32
    %c0_i32_1 = arith.constant 0 : i32
    %c0_i32_2 = arith.constant 0 : i32
    return %c0_i32, %c0_i32_0, %c0_i32_1 : i32, i32, i32
  }
  func.func @transform_4(%arg0: i32) -> (i32, i32) {
    %c0_i32 = arith.constant 0 : i32
    %c0_i32_0 = arith.constant 0 : i32
    %c0_i32_1 = arith.constant 0 : i32
    return %c0_i32, %c0_i32_0 : i32, i32
  }
  func.func @transform_5(%arg0: i32) -> (i32, i32, i32) {
    %c0_i32 = arith.constant 0 : i32
    %c0_i32_0 = arith.constant 0 : i32
    %c0_i32_1 = arith.constant 0 : i32
    return %arg0, %c0_i32, %c0_i32_0 : i32, i32, i32
  }
  func.func @transform_6(%arg0: i32) -> (i32, i32, i32) {
    %c0_i32 = arith.constant 0 : i32
    %c0_i32_0 = arith.constant 0 : i32
    %c0_i32_1 = arith.constant 0 : i32
    return %arg0, %c0_i32, %c0_i32_0 : i32, i32, i32
  }
}

</mosaic_0001>

<bundles_post_ra>
// kernel: tpu_custom_call.1
= control target key start
LH: loop header
LB: loop body
LE: loop exit
PB: predicated region body
PF: predicated region fallthrough
CT: control target
= control target key end

     0   :  { %12 = vsyncpa [#allocation5], 0  ;;  %s2115_s0 = inlined_call_operand.hbm [shape: f32[2,16,64], index: 0, kind: input, shape index: {}]   ;;  %s2116_s1 = inlined_call_operand.hbm [shape: f32[3,64,128], index: 1, kind: input, shape index: {}]   ;;  %s2117_s2 = inlined_call_operand.vmem [shape: f32[1,128], index: 2, kind: input, shape index: {}]   ;;  %s2118_s3 = inlined_call_operand.hbm [shape: f32[3,128,128], index: 3, kind: input, shape index: {}]   ;;  %s2119_s4 = inlined_call_operand.vmem [shape: f32[1,128], index: 4, kind: input, shape index: {}]   ;;  %s2120_s5 = inlined_call_operand.hbm [shape: f32[2,16,128], index: 5, kind: output, shape index: {0}]   ;;  %s2121_s6 = inlined_call_operand.hbm [shape: f32[2,8,128], index: 6, kind: output, shape index: {1}]  }
   0x1   :  { %14 = vsyncpa [#allocation5 + $0x1], 0 }
   0x2   :  { %15 = vsyncpa [#allocation8], 0 }
   0x3   :  { %16 = vsyncpa [#allocation6], 0 }
   0x4   :  { %18 = vsyncpa [#allocation6 + $0x1], 0 }
   0x5   :  { %19 = vsyncpa [#allocation12], 0 }
   0x6   :  { %21 = vsyncpa [#allocation12 + $0x1], 0  ;;  %s1816_s21 = smov 0   ;;  %s1818_s22 = smov 0  }
   0x7   :  { %s1820_s23 = smov 0   ;;  %s1822_s24 = smov 0  }
   0x8 LB: > { %s1837_s25 = sadd.s32 4294967295, %s1768_s24   ;;  %s1072_s26 = sadd.s32 4294967294, %s1768_s24   ;;  %s1768_s24 = sphi %s1822_s24, %s2141_s24   ;;  %s1764_s23 = sphi %s1820_s23, %s2140_s23   ;;  %s1760_s22 = sphi %s1818_s22, %s2139_s22   ;;  %s1756_s21 = sphi %s1816_s21, %s2138_s21  }
   0x9   : > { %p47_p0 = scmp.ne.s32.totalorder %s1760_s22, %s1756_s21  ;;  %p2122_p1 = scmp.eq.s32.totalorder %s1837_s25, 0 }
   0xa   : > { %p161_p3 = scmp.eq.s32.totalorder %s1072_s26, 1  ;;  %p1073_p5 = scmp.ge.s32.totalorder %s1768_s24, 1 }
   0xb   : > { %p1846_p4 = por %p2122_p1, %p47_p0  ;;  %p194_p7 = scmp.lt.s32.totalorder %s1768_s24, 3 }
   0xc   : > { %p1851_p6 = por %p161_p3, %p47_p0  ;;  %s1770_s30 = smov [#allocation7]  }
   0xd   : > { %s2125_s27 = scalar_select %p1846_p4, 1, 0 }
   0xe   : > { %s2126_s28 = scalar_select %p1851_p6, 1, 0 }
   0xf   : > { %p1856_p8 = pnand %p1073_p5, %p194_p7  ;;  %s206_s7 = sshll.u32 %s1770_s30, 4  ;;  %s1860_s7 = int_to_ptr.vmem [resolvable:$true] %s206_s7 }
  0x10   : > { %s1771_s9 = smov [#allocation9]   ;;  %s1580_s13 = scalar_lea.hbm %s2116_s1, 3072 }
  0x11   : > { %p1516_p9 = pneg %p1856_p8  ;;  %s222_s10 = sshll.u32 %s1771_s9, 4  ;;  %s1871_s10 = int_to_ptr.vmem [resolvable:$true] %s222_s10 }
  0x12   : > { %p1581_p12 = scmp.ne.s32.totalorder %s2116_s1, %s1580_s13  ;;  %p1587_p5 = scmp.lt.u32.totalorder %s1580_s13, %s2116_s1 }
  0x13   : > { %p1867_p11 = pnand %p1516_p9, %p2122_p1 }
  0x15   : > { %p1582_p13 = pneg %p1867_p11 }
  0x17   : > { %p1583_p0 = pnand %p1582_p13, %p1581_p12 }
  0x19   : > { %p1584_p3 = pneg %p1583_p0 }
  0x1b   : > { %p1589_p7 = pnand %p1587_p5, %p1584_p3 }
  0x1d   : > { %1592 = shalt.err (!%p1589_p7)
}
  0x1e   : > { %s1593_s18 = scalar_lea.vmem %s1860_s7, 3072  ;;  %p1601_p2 = scmp.lt.s32.totalorder %s1860_s7, %s1860_s7 }
  0x1f   : > { %p1594_p9 = scmp.ne.s32.totalorder %s1860_s7, %s1593_s18  ;;  %p1602_p12 = scmp.lt.s32.totalorder %s1593_s18, %s1593_s18 }
  0x21   : > { %p1596_p10 = pnand %p1594_p9, %p1582_p13  ;;  %p1603_p0 = por %p1602_p12, %p1601_p2 }
  0x23   : > { %p1597_p1 = pneg %p1596_p10 }
  0x25   : > { %p1604_p6 = pnand %p1603_p0, %p1597_p1 }
  0x27   : > { %1607 = shalt.err (!%p1604_p6)
}
  0x28   : > { %s1772_s19 = smov 128   ;;  %s1773_s20 = smov 8  }
  0x29   : > { %1519 = dma.hbm_to_vmem [thread:$0]  (!%p1867_p11), %s2116_s1, 3072, %s1860_s7, [#allocation8], %s1772_s19, %s1772_s19, %s1773_s20  }
  0x2a   : > { %s1608_s12 = scalar_lea.hbm %s2118_s3, 6144 }
  0x2b   : > { %p1609_p1 = scmp.ne.s32.totalorder %s2118_s3, %s1608_s12  ;;  %p1615_p10 = scmp.lt.u32.totalorder %s1608_s12, %s2118_s3 }
  0x2d   : > { %p1611_p2 = pnand %p1609_p1, %p1582_p13 }
  0x2f   : > { %p1612_p6 = pneg %p1611_p2 }
  0x31   : > { %p1617_p3 = pnand %p1615_p10, %p1612_p6 }
  0x33   : > { %1620 = shalt.err (!%p1617_p3)
}
  0x34   : > { %s1621_s7 = scalar_lea.vmem %s1871_s10, 6144  ;;  %p1629_p12 = scmp.lt.s32.totalorder %s1871_s10, %s1871_s10 }
  0x35   : > { %p1622_p5 = scmp.ne.s32.totalorder %s1871_s10, %s1621_s7  ;;  %p1630_p0 = scmp.lt.s32.totalorder %s1621_s7, %s1621_s7 }
  0x37   : > { %p1624_p7 = pnand %p1622_p5, %p1582_p13  ;;  %p1631_p1 = por %p1630_p0, %p1629_p12 }
  0x39   : > { %p1625_p9 = pneg %p1624_p7 }
  0x3b   : > { %p1632_p2 = pnand %p1631_p1, %p1625_p9 }
  0x3d   : > { %1635 = shalt.err (!%p1632_p2)
}
  0x3e   : > { %1522 = dma.hbm_to_vmem [thread:$0]  (!%p1867_p11), %s2118_s3, 6144, %s1871_s10, [#allocation8], %s1772_s19, %s1772_s19, %s1773_s20  }
  0x3f   : > { %s1932_s8 = sadd.s32 1, %s1768_s24   ;;  %s34_s26 = sadd.s32 1, %s1764_s23 }
  0x40   : > { %s31_s30 = ssub.s32 %s1768_s24, %s1932_s8  ;;  %p41_p13 = scmp.ne.s32.totalorder %s1764_s23, %s1760_s22 }
  0x41   : > { %p32_p6 = scmp.eq.s32.totalorder %s31_s30, 0  ;;  %p42_p10 = scmp.eq.s32.totalorder %s1768_s24, 0 }
  0x42   : > { %p2129_p3 = scmp.eq.s32.totalorder %s1837_s25, 1  ;;  %p1536_p7 = scmp.lt.s32.totalorder %s1768_s24, 2 }
  0x43   : > { %s1948_s11 = scalar_select %p32_p6, %s1764_s23, %s34_s26  }
  0x44   : > { %p1942_p5 = por %p2129_p3, %p41_p13  ;;  %p43_p9 = por %p42_p10, %p41_p13 }
  0x45   : > { %s239_s12 = sand.u32 1, %s1764_s23   ;;  %s1102_s10 = sshll.u32 %s1768_s24, 8 }
  0x46   : > { %s2130_s9 = scalar_select %p1942_p5, 1, 0 }
  0x47   : > { %s1077_s13 = sshll.u32 %s239_s12, 4  ;;  %s1955_s16 = scalar_lea.hbm %s2115_s0, %s1102_s10 }
  0x48   : > { %s243_s7 = scalar_lea.vmem [#allocation4], %s1077_s13  ;;  %p1959_p11 = pnand %p1536_p7, %p43_p9 }
  0x49   : > { %s250_s17 = sshll.u32 %s243_s7, 4  ;;  %s1963_s26 = scalar_lea.sflag [#allocation5], %s239_s12  ;;  %s1957_s17 = int_to_ptr.vmem [resolvable:$true] %s250_s17 }
  0x4a   : > { %s1636_s30 = scalar_lea.hbm %s1955_s16, 256  ;;  %p1638_p0 = pneg %p1959_p11 }
  0x4b   : > { %p1637_p12 = scmp.ne.s32.totalorder %s1955_s16, %s1636_s30  ;;  %s1641_s14 = scalar_lea.hbm %s2115_s0, 512 }
  0x4c   : > { %p1642_p13 = scmp.lt.u32.totalorder %s1955_s16, %s2115_s0  ;;  %p1643_p6 = scmp.lt.u32.totalorder %s1641_s14, %s1636_s30 }
  0x4d   : > { %p1639_p1 = pnand %p1638_p0, %p1637_p12  ;;  %p1645_p3 = scmp.lt.u32.totalorder %s1636_s30, %s1955_s16 }
  0x4e   : > { %p1644_p10 = por %p1643_p6, %p1642_p13 }
  0x4f   : > { %p1640_p2 = pneg %p1639_p1 }
  0x50   : > { %p1646_p7 = por %p1645_p3, %p1644_p10 }
  0x52   : > { %p1647_p9 = pnand %p1646_p7, %p1640_p2 }
  0x54   : > { %1650 = shalt.err (!%p1647_p9)
}
  0x55   : > { %s1651_s12 = scalar_lea.vmem %s1957_s17, 256  ;;  %s1774_s13 = smov [#allocation4]  }
  0x56   : > { %p1652_p12 = scmp.ne.s32.totalorder %s1957_s17, %s1651_s12  ;;  %s1656_s10 = sshll.u32 %s1774_s13, 4  ;;  %s1657_s10 = int_to_ptr.vmem [resolvable:$false] %s1656_s10 }
  0x57   : > { %s1658_s15 = scalar_lea.vmem %s1657_s10, 512  ;;  %p1659_p4 = scmp.lt.s32.totalorder %s1957_s17, %s1657_s10 }
  0x58   : > { %p1654_p1 = pnand %p1652_p12, %p1638_p0  ;;  %p1660_p13 = scmp.lt.s32.totalorder %s1658_s15, %s1651_s12 }
  0x5a   : > { %p1655_p5 = pneg %p1654_p1  ;;  %p1661_p6 = por %p1660_p13, %p1659_p4 }
  0x5c   : > { %p1662_p10 = pnand %p1661_p6, %p1655_p5 }
  0x5e   : > { %1665 = shalt.err (!%p1662_p10)
}
  0x5f   : > { %1526 = dma.hbm_to_vmem [thread:$0]  (!%p1959_p11), %s1955_s16, 256, %s1957_s17, %s1963_s26, %s1772_s19, %s1772_s19, %s1773_s20  }
  0x60   : > { %262 = sbr.rel (%p1856_p8) target bundleno = 782 (0x30e), region = 40  ;;  %s1997_s30 = sand.u32 (!%p1856_p8), 1, %s1760_s22  }
  0x61   : > { %s1081_s14 = sshll.u32 (!%p1856_p8), %s1997_s30, 4  ;;  %s265_s7 = scalar_lea.sflag (!%p1856_p8), [#allocation5], %s1997_s30 }
  0x62   : > { %s268_s18 = scalar_lea.vmem (!%p1856_p8), [#allocation4], %s1081_s14  ;;  %p2132_p4 = scmp.ne.s32.totalorder (!%p1856_p8), %s2125_s27, 0 }
  0x67   : > { %1739 = dma.done.wait (%p2132_p4), %s265_s7, 256  }
  0x68   : > { %1741 = vsyncadd (%p2132_p4), %s265_s7, 4294967040  ;;  %p2133_p5 = scmp.eq.s32.totalorder %s1837_s25, 0 }
  0x6a   : > { %1743 = dma.done.wait (%p2133_p5), [#allocation8], 9216   ;;  %p2134_p8 = pmov %p2133_p5 }
  0x6b   : > { %vm310_vm0 = vcmask 516096   ;;  %v1775_v0 = vmov 0.0   ;;  %v333_v1 = vld [vmem:[#allocation7 + $0x40] sm:$0xff]  ;;  %v334_v2 = vld [vmem:[#allocation7 + $0x48] sm:$0xff]  ;;  %v335_v3 = vld [vmem:[#allocation7 + $0x50] sm:$0xff]  ;;  %vm317_vm1 = vcmask 523264  }
  0x6c   : > { %1745 = vsyncadd (%p2134_p8), [#allocation8], 4294958080  ;;  %311 = vst.msk [vmem:[#allocation2] sm:$0x1] %vm310_vm0, %v1775_v0  ;;  %v1350_v4 = vpack.c.bf16 %v334_v2, %v333_v1  ;;  %v336_v5 = vld [vmem:[#allocation7 + $0x58] sm:$0xff]  ;;  %v337_v7 = vld [vmem:[#allocation7 + $0x60] sm:$0xff] }
  0x6d   : > { %312 = vst.msk [vmem:[#allocation2 + $0x11] sm:$0x1] %vm310_vm0, %v1775_v0  ;;  %313 = vst [vmem:[#allocation3] sm:$0x1] %v1775_v0  ;;  %v1354_v6 = vpack.c.bf16 %v336_v5, %v335_v3  ;;  %v338_v8 = vld [vmem:[#allocation7 + $0x68] sm:$0xff]  ;;  %v315_v9 = vld [vmem:[%s268_s18] sm:$0xff] }
  0x6e   : > { %314 = vst [vmem:[#allocation3 + $0x11] sm:$0x1] %v1775_v0  ;;  %1351 = vmatprep.subr.bf16.mxu0 %v1350_v4  ;;  %v316_v10 = vld [vmem:[%s268_s18 + $0x8] sm:$0xff]  ;;  %318 = vst.msk [vmem:[#allocation2 + $0x1] sm:$0xff] %vm317_vm1, %v315_v9  ;;  %v1358_v11 = vpack.c.bf16 %v338_v8, %v337_v7  ;;  %v339_v12 = vld [vmem:[#allocation7 + $0x70] sm:$0xff]  ;;  %s1103_s16 = sshll.u32 %s1837_s25, 8 }
  0x6f   : > { %1353 = vmatpush3.bf16.msra.mxu0 %v1350_v4  ;;  %319 = vst.msk [vmem:[#allocation2 + $0x9] sm:$0xff] %vm317_vm1, %v316_v10  ;;  %v340_v13 = vld [vmem:[#allocation7 + $0x78] sm:$0xff]  ;;  %v612_v14 = vld [vmem:[#allocation9] sm:$0xff]  ;;  %v613_v17 = vld [vmem:[#allocation9 + $0x8] sm:$0xff]  ;;  %s2028_s17 = scalar_lea.vmem [#allocation10], %s1081_s14  ;;  %s2035_s10 = scalar_lea.hbm %s2120_s5, %s1103_s16 }
  0x70   : > { %1355 = vmatprep.subr.bf16.mxu0 %v1354_v6  ;;  %v1362_v15 = vpack.c.bf16 %v340_v13, %v339_v12  ;;  %v322_v16 = vld [vmem:[#allocation7] sm:$0xff]  ;;  %v323_v19 = vld [vmem:[#allocation7 + $0x8] sm:$0xff]  ;;  %v1430_v20 = vpack.c.bf16 %v613_v17, %v612_v14  ;;  %v614_v21 = vld [vmem:[#allocation9 + $0x10] sm:$0xff]  ;;  %s935_s26 = sshll.u32 %s2028_s17, 4  ;;  %s917_s15 = scalar_lea.sflag [#allocation6], %s1997_s30  ;;  %s2038_s26 = int_to_ptr.vmem [resolvable:$true] %s935_s26 }
  0x71   : > { %v615_v22 = vld [vmem:[#allocation9 + $0x18] sm:$0xff]  ;;  %v1366_v23 = vpack.c.bf16 %v323_v19, %v322_v16  ;;  %v616_v25 = vld [vmem:[#allocation9 + $0x20] sm:$0xff]  ;;  %v617_v26 = vld [vmem:[#allocation9 + $0x28] sm:$0xff]  ;;  %s1666_s7 = scalar_lea.vmem %s2038_s26, 256  ;;  %p2135_p0 = scmp.ne.s32.totalorder %s2130_s9, 0 }
  0x72   : > { %1431 = vmatprep.subr.bf16.mxu1 %v1430_v20  ;;  %v1434_v24 = vpack.c.bf16 %v615_v22, %v614_v21  ;;  %v324_v27 = vld [vmem:[#allocation7 + $0x10] sm:$0xff]  ;;  %v325_v28 = vld [vmem:[#allocation7 + $0x18] sm:$0xff]  ;;  %v1438_v29 = vpack.c.bf16 %v617_v26, %v616_v25  ;;  %v326_v35 = vld [vmem:[#allocation7 + $0x20] sm:$0xff]  ;;  %p1667_p11 = scmp.ne.s32.totalorder %s2038_s26, %s1666_s7  ;;  %s1776_s14 = smov [#allocation10]  }
  0x73   : > { %1357 = vmatpush3.bf16.msra.mxu0 %v1354_v6  ;;  %1433 = vmatpush3.bf16.msra.mxu1 %v1430_v20  ;;  %v618_v30 = vld [vmem:[#allocation9 + $0x30] sm:$0xff]  ;;  %v619_v31 = vld [vmem:[#allocation9 + $0x38] sm:$0xff]  ;;  %v1370_v33 = vpack.c.bf16 %v325_v28, %v324_v27  ;;  %v327_v36 = vld [vmem:[#allocation7 + $0x28] sm:$0xff]  ;;  %s1670_s18 = sshll.u32 %s1776_s14, 4  ;;  %s1671_s18 = int_to_ptr.vmem [resolvable:$false] %s1670_s18 }
  0x74   : > { %1359 = vmatprep.subr.bf16.mxu0 %v1358_v11  ;;  %1435 = vmatprep.subr.bf16.mxu1 %v1434_v24  ;;  %v1442_v37 = vpack.c.bf16 %v619_v31, %v618_v30  ;;  %v620_v38 = vld [vmem:[#allocation9 + $0x40] sm:$0xff]  ;;  %v621_v39 = vld [vmem:[#allocation9 + $0x48] sm:$0xff]  ;;  %v1374_v40 = vpack.c.bf16 %v327_v36, %v326_v35  ;;  %v328_v41 = vld [vmem:[#allocation7 + $0x30] sm:$0xff]  ;;  %p1668_p2 = pnand %p1667_p11, %p2135_p0  ;;  %s1672_s27 = scalar_lea.vmem %s1671_s18, 512 }
  0x75   : > { %v330_v18 = vld [vmem:[#allocation2 + $0x1] sm:$0xff]  ;;  %v1446_v43 = vpack.c.bf16 %v621_v39, %v620_v38  ;;  %v506_v45 = vld [vmem:[#allocation7 + $0x80] sm:$0xff]  ;;  %v507_v46 = vld [vmem:[#allocation7 + $0x88] sm:$0xff]  ;;  %p1673_p7 = scmp.lt.s32.totalorder %s2038_s26, %s1671_s18  ;;  %p1674_p9 = scmp.lt.s32.totalorder %s1672_s27, %s1666_s7 }
  0x76   : > { %1204 = vmatprep.mubr.msk.f32.mxu0 %vm317_vm1, %v330_v18  ;;  %v331_v32 = vld [vmem:[#allocation2 + $0x9] sm:$0xff]  ;;  %v320_v34 = vld [vmem:[#allocation2] sm:$0xff]  ;;  %v1382_v47 = vpack.c.bf16 %v507_v46, %v506_v45  ;;  %v511_v54 = vld [vmem:[#allocation7 + $0xa8] sm:$0xff]  ;;  %p1669_p3 = pneg %p1668_p2 }
  0x77   : > { %1361 = vmatpush3.bf16.msra.mxu0 %v1358_v11  ;;  %1437 = vmatpush3.bf16.msra.mxu1 %v1434_v24  ;;  %v329_v42 = vld [vmem:[#allocation7 + $0x38] sm:$0xff]  ;;  %v508_v48 = vld [vmem:[#allocation7 + $0x90] sm:$0xff]  ;;  %v510_v53 = vld [vmem:[#allocation7 + $0xa0] sm:$0xff]  ;;  %p1675_p12 = por %p1674_p9, %p1673_p7 }
  0x78   : > { %1363 = vmatprep.subr.bf16.mxu0 %v1362_v15  ;;  %1439 = vmatprep.subr.bf16.mxu1 %v1438_v29  ;;  %v1378_v44 = vpack.c.bf16 %v329_v42, %v328_v41  ;;  %v509_v49 = vld [vmem:[#allocation7 + $0x98] sm:$0xff]  ;;  %v1390_v55 = vpack.c.bf16 %v511_v54, %v510_v53  ;;  %v512_v56 = vld [vmem:[#allocation7 + $0xb0] sm:$0xff]  ;;  %v631_v59 = vld [vmem:[#allocation9 + $0x80] sm:$0xff] }
  0x79   : > { %v321_v50 = vld [vmem:[#allocation2 + $0x8] sm:$0xff]  ;;  %v1386_v51 = vpack.c.bf16 %v509_v49, %v508_v48  ;;  %v632_v60 = vld [vmem:[#allocation9 + $0x88] sm:$0xff]  ;;  %v633_v62 = vld [vmem:[#allocation9 + $0x90] sm:$0xff]  ;;  %p1676_p1 = pnand %p1675_p12, %p1669_p3 }
  0x7a   : > { %v503_v52 = vld [vmem:[#allocation2 + $0x2] sm:$0xff]  ;;  %v1398_v61 = vpack.c.bf16 %v632_v60, %v631_v59  ;;  %v504_v0 = vld [vmem:[#allocation2 + $0xa] sm:$0xff]  ;;  %v636_v3 = vld [vmem:[#allocation9 + $0xa8] sm:$0xff] }
  0x7b   : > { %1365 = vmatpush3.bf16.msra.mxu0 %v1362_v15  ;;  %1441 = vmatpush3.bf16.msra.mxu1 %v1438_v29  ;;  %v513_v57 = vld [vmem:[#allocation7 + $0xb8] sm:$0xff]  ;;  %v635_v2 = vld [vmem:[#allocation9 + $0xa0] sm:$0xff]  ;;  %v637_v5 = vld [vmem:[#allocation9 + $0xb0] sm:$0xff] }
  0x7c   : > { %1367 = vmatprep.subr.bf16.mxu0 %v1366_v23  ;;  %1443 = vmatprep.subr.bf16.mxu1 %v1442_v37  ;;  %v1394_v58 = vpack.c.bf16 %v513_v57, %v512_v56  ;;  %v634_v63 = vld [vmem:[#allocation9 + $0x98] sm:$0xff]  ;;  %v1406_v4 = vpack.c.bf16 %v636_v3, %v635_v2  ;;  %v639_v8 = vld [vmem:[#allocation9 + $0xc0] sm:$0xff]  ;;  %v640_v9 = vld [vmem:[#allocation9 + $0xc8] sm:$0xff] }
  0x7d   : > { %v1402_v1 = vpack.c.bf16 %v634_v63, %v633_v62  ;;  %v638_v6 = vld [vmem:[#allocation9 + $0xb8] sm:$0xff]  ;;  %v1414_v10 = vpack.c.bf16 %v640_v9, %v639_v8  ;;  %v641_v11 = vld [vmem:[#allocation9 + $0xd0] sm:$0xff]  ;;  %v643_v14 = vld [vmem:[#allocation9 + $0xe0] sm:$0xff] }
  0x7e   : > { %1205 = vmatmul.mubr.msk.f32.vlgmr.msra.gmra.mrb[0].mxu0 %vm317_vm1, %v331_v32  ;;  %v1410_v7 = vpack.c.bf16 %v638_v6, %v637_v5  ;;  %v642_v12 = vld [vmem:[#allocation9 + $0xd8] sm:$0xff]  ;;  %v644_v15 = vld [vmem:[#allocation9 + $0xe8] sm:$0xff]  ;;  %v622_v17 = vld [vmem:[#allocation9 + $0x50] sm:$0xff] }
  0x7f   : > { %1369 = vmatpush3.bf16.msra.mxu0 %v1366_v23  ;;  %1223 = vmatprep.mubr.msk.f32.mxu0 %vm317_vm1, %v320_v34  ;;  %v1418_v13 = vpack.c.bf16 %v642_v12, %v641_v11  ;;  %v1422_v16 = vpack.c.bf16 %v644_v15, %v643_v14  ;;  %v623_v18 = vld [vmem:[#allocation9 + $0x58] sm:$0xff]  ;;  %v645_v20 = vld [vmem:[#allocation9 + $0xf0] sm:$0xff]  ;;  %v624_v23 = vld [vmem:[#allocation9 + $0x60] sm:$0xff] }
  0x80   : > { %1371 = vmatprep.subr.bf16.mxu0 %v1370_v33  ;;  %1445 = vmatpush3.bf16.msra.mxu1 %v1442_v37  ;;  %v1450_v19 = vpack.c.bf16 %v623_v18, %v622_v17  ;;  %v646_v21 = vld [vmem:[#allocation9 + $0xf8] sm:$0xff]  ;;  %v625_v24 = vld [vmem:[#allocation9 + $0x68] sm:$0xff]  ;;  %v626_v26 = vld [vmem:[#allocation9 + $0x70] sm:$0xff] }
  0x81   : > { %1447 = vmatprep.subr.bf16.mxu1 %v1446_v43  ;;  %v1426_v22 = vpack.c.bf16 %v646_v21, %v645_v20  ;;  %v1454_v25 = vpack.c.bf16 %v625_v24, %v624_v23  ;;  %v627_v27 = vld [vmem:[#allocation9 + $0x78] sm:$0xff]  ;;  %v800_v29 = vld [vmem:[#allocation9 + $0x100] sm:$0xff]  ;;  %v801_v30 = vld [vmem:[#allocation9 + $0x108] sm:$0xff] }
  0x82   : > { %v1458_v28 = vpack.c.bf16 %v627_v27, %v626_v26  ;;  %v1462_v31 = vpack.c.bf16 %v801_v30, %v800_v29  ;;  %v1092_v32 = vld [vmem:[%s2117_s2] ss:$0 sm:$0xff]  ;;  %v805_v45 = vld [vmem:[#allocation9 + $0x128] sm:$0xff]  ;;  %v807_v49 = vld [vmem:[#allocation9 + $0x138] sm:$0xff] }
  0x83   : > { %1373 = vmatpush3.bf16.msra.mxu0 %v1370_v33  ;;  %v802_v39 = vld [vmem:[#allocation9 + $0x110] sm:$0xff]  ;;  %v812_v57 = vld [vmem:[#allocation9 + $0x160] sm:$0xff] }
  0x84   : > { %1375 = vmatprep.subr.bf16.mxu0 %v1374_v40  ;;  %1449 = vmatpush3.bf16.msra.mxu1 %v1446_v43  ;;  %v806_v48 = vld [vmem:[#allocation9 + $0x130] sm:$0xff] }
  0x85   : > { %1451 = vmatprep.subr.bf16.mxu1 %v1450_v19  ;;  %v810_v54 = vld [vmem:[#allocation9 + $0x150] sm:$0xff] }
  0x86   : > { %v814_v60 = vld [vmem:[#allocation9 + $0x170] sm:$0xff] }
  0x87   : > { %1377 = vmatpush3.bf16.msra.mxu0 %v1374_v40  ;;  %v803_v40 = vld [vmem:[#allocation9 + $0x118] sm:$0xff]  ;;  %v1093_v3 = vld [vmem:[%s2119_s4] ss:$0 sm:$0xff] }
  0x88   : > { %1379 = vmatprep.subr.bf16.mxu0 %v1378_v44  ;;  %1453 = vmatpush3.bf16.msra.mxu1 %v1450_v19  ;;  %v1466_v43 = vpack.c.bf16 %v803_v40, %v802_v39 }
  0x89   : > { %1455 = vmatprep.subr.bf16.mxu1 %v1454_v25 }
  0x8b   : > { %1381 = vmatpush3.bf16.msra.mxu0 %v1378_v44  ;;  %v804_v44 = vld [vmem:[#allocation9 + $0x120] sm:$0xff] }
  0x8c   : > { %1383 = vmatprep.subr.bf16.mxu0 %v1382_v47  ;;  %1457 = vmatpush3.bf16.msra.mxu1 %v1454_v25 }
  0x8d   : > { %1459 = vmatprep.subr.bf16.mxu1 %v1458_v28 }
  0x8e   : > { %1224 = vmatmul.mubr.msk.f32.vlgmr.msra.gmra.mrb[0].mxu0 %vm317_vm1, %v321_v50  ;;  %v1474_v50 = vpack.c.bf16 %v807_v49, %v806_v48 }
  0x8f   : > { %1385 = vmatpush3.bf16.msra.mxu0 %v1382_v47  ;;  %1242 = vmatprep.mubr.msk.f32.mxu0 %vm317_vm1, %v503_v52  ;;  %v1470_v47 = vpack.c.bf16 %v805_v45, %v804_v44  ;;  %v809_v52 = vld [vmem:[#allocation9 + $0x148] sm:$0xff] }
  0x90   : > { %1387 = vmatprep.subr.bf16.mxu0 %v1386_v51  ;;  %1461 = vmatpush3.bf16.msra.mxu1 %v1458_v28 }
  0x91   : > { %1463 = vmatprep.subr.bf16.mxu1 %v1462_v31 }
  0x93   : > { %1389 = vmatpush3.bf16.msra.mxu0 %v1386_v51  ;;  %v808_v51 = vld [vmem:[#allocation9 + $0x140] sm:$0xff] }
  0x94   : > { %1391 = vmatprep.subr.bf16.mxu0 %v1390_v55  ;;  %v1478_v53 = vpack.c.bf16 %v809_v52, %v808_v51 }
  0x97   : > { %1393 = vmatpush3.bf16.msra.mxu0 %v1390_v55  ;;  %v811_v55 = vld [vmem:[#allocation9 + $0x158] sm:$0xff] }
  0x98   : > { %1395 = vmatprep.subr.bf16.mxu0 %v1394_v58  ;;  %v1482_v56 = vpack.c.bf16 %v811_v55, %v810_v54 }
  0x9b   : > { %1397 = vmatpush3.bf16.msra.mxu0 %v1394_v58  ;;  %v813_v58 = vld [vmem:[#allocation9 + $0x168] sm:$0xff] }
  0x9c   : > { %1399 = vmatprep.subr.bf16.mxu0 %v1398_v61  ;;  %v1486_v59 = vpack.c.bf16 %v813_v58, %v812_v57 }
  0x9e   : > { %1243 = vmatmul.mubr.msk.f32.vlgmr.msra.gmra.mrb[0].mxu0 %vm317_vm1, %v504_v0 }
  0x9f   : > { %1401 = vmatpush3.bf16.msra.mxu0 %v1398_v61  ;;  %v815_v61 = vld [vmem:[#allocation9 + $0x178] sm:$0xff] }
  0xa0   : > { %1403 = vmatprep.subr.bf16.mxu0 %v1402_v1  ;;  %v1490_v62 = vpack.c.bf16 %v815_v61, %v814_v60 }
  0xa3   : > { %1405 = vmatpush3.bf16.msra.mxu0 %v1402_v1 }
  0xa4   : > { %1407 = vmatprep.subr.bf16.mxu0 %v1406_v4 }
  0xa7   : > { %1409 = vmatpush3.bf16.msra.mxu0 %v1406_v4 }
  0xa8   : > { %1411 = vmatprep.subr.bf16.mxu0 %v1410_v7 }
  0xab   : > { %1413 = vmatpush3.bf16.msra.mxu0 %v1410_v7 }
  0xac   : > { %1415 = vmatprep.subr.bf16.mxu0 %v1414_v10 }
  0xaf   : > { %1417 = vmatpush3.bf16.msra.mxu0 %v1414_v10 }
  0xb0   : > { %1419 = vmatprep.subr.bf16.mxu0 %v1418_v13 }
  0xb3   : > { %1421 = vmatpush3.bf16.msra.mxu0 %v1418_v13 }
  0xb4   : > { %1423 = vmatprep.subr.bf16.mxu0 %v1422_v16 }
  0xb7   : > { %1425 = vmatpush3.bf16.msra.mxu0 %v1422_v16 }
  0xb8   : > { %1427 = vmatprep.subr.bf16.mxu0 %v1426_v22 }
  0xbb   : > { %1429 = vmatpush3.bf16.msra.mxu0 %v1426_v22 }
 0x171   : > { %v1244_v33 = vpop.f32.mrb[0].mxu0 }
 0x172   : > { %v605_v34 = vadd.f32 %v1244_v33, %v1092_v32  ;;  %v586_v35 = vpop.f32.mrb[1].mxu0 }
 0x173   : > { %v604_v36 = vadd.f32 %v1092_v32, %v586_v35 }
 0x174   : > { %v607_v37 = vmax.f32 %v605_v34, 0.0 }
 0x175   : > { %v606_v38 = vmax.f32 %v604_v36, 0.0 }
 0x176   : > { %609 = vst [vmem:[#allocation3 + $0x9] sm:$0xff] %v607_v37 }
 0x177   : > { %608 = vst [vmem:[#allocation3 + $0x1] sm:$0xff] %v606_v38  ;;  %1277 = vmatprep.mubr.f32.mxu0 %v606_v38 }
 0x178   : > { %1278 = vmatmul.mubr.f32.vlgmr.msra.gmra.mrb[2].mxu0 %v607_v37 }
 0x17d   : > { %v798_v63 = vld [vmem:[#allocation3 + $0xa] sm:$0xff] }
 0x17e   : > { %v610_v41 = vld [vmem:[#allocation3] sm:$0xff]  ;;  %v611_v42 = vld [vmem:[#allocation3 + $0x8] sm:$0xff] }
 0x17f   : > { %1312 = vmatprep.mubr.f32.mxu1 %v610_v41  ;;  %v797_v46 = vld [vmem:[#allocation3 + $0x2] sm:$0xff] }
 0x180   : > { %1313 = vmatmul.mubr.f32.vlgmr.msra.gmra.mrb[0].mxu1 %v611_v42 }
 0x181   : > { %1465 = vmatpush3.bf16.msra.mxu1 %v1462_v31  ;;  %1347 = vmatprep.mubr.f32.mxu1 %v797_v46 }
 0x182   : > { %1467 = vmatprep.subr.bf16.mxu1 %v1466_v43 }
 0x185   : > { %1469 = vmatpush3.bf16.msra.mxu1 %v1466_v43 }
 0x186   : > { %1471 = vmatprep.subr.bf16.mxu1 %v1470_v47 }
 0x189   : > { %1473 = vmatpush3.bf16.msra.mxu1 %v1470_v47 }
 0x18a   : > { %1475 = vmatprep.subr.bf16.mxu1 %v1474_v50 }
 0x18d   : > { %1477 = vmatpush3.bf16.msra.mxu1 %v1474_v50 }
 0x18e   : > { %1479 = vmatprep.subr.bf16.mxu1 %v1478_v53 }
 0x191   : > { %1481 = vmatpush3.bf16.msra.mxu1 %v1478_v53 }
 0x192   : > { %1483 = vmatprep.subr.bf16.mxu1 %v1482_v56 }
 0x195   : > { %1485 = vmatpush3.bf16.msra.mxu1 %v1482_v56 }
 0x196   : > { %1487 = vmatprep.subr.bf16.mxu1 %v1486_v59 }
 0x199   : > { %1489 = vmatpush3.bf16.msra.mxu1 %v1486_v59 }
 0x19a   : > { %1491 = vmatprep.subr.bf16.mxu1 %v1490_v62 }
 0x19d   : > { %1493 = vmatpush3.bf16.msra.mxu1 %v1490_v62 }
 0x1a0   : > { %1348 = vmatmul.mubr.f32.vlgmr.msra.gmra.mrb[0].mxu1 %v798_v63 }
 0x24b   : > { %v1279_v0 = vpop.f32.mrb[2].mxu0 }
 0x24c   : > { %v713_v1 = vpop.f32.mrb[3].mxu0 }
 0x273   : > { %v1349_v2 = vpop.f32.mrb[0].mxu1 }
 0x274   : > { %v1494_v4 = vadd.f32 %v1349_v2, %v1279_v0  ;;  %v882_v5 = vpop.f32.mrb[1].mxu1 }
 0x275   : > { %v1495_v6 = vadd.f32 %v882_v5, %v713_v1 }
 0x276   : > { %v901_v7 = vadd.f32 %v1494_v4, %v1093_v3 }
 0x277   : > { %v900_v8 = vadd.f32 %v1495_v6, %v1093_v3 }
 0x278   : > { %v903_v9 = vmax.f32 %v901_v7, 0.0 }
 0x279   : > { %v902_v10 = vmax.f32 %v900_v8, 0.0 }
 0x27a   : > { %905 = vst [vmem:[%s2028_s17 + $0x8] sm:$0xff] %v903_v9 }
 0x27b   : > { %904 = vst [vmem:[%s2028_s17] sm:$0xff] %v902_v10 }
 0x27c   : > { %1679 = shalt.err (!%p1676_p1)
}
 0x27d   : > { %s1680_s29 = scalar_lea.hbm %s2035_s10, 256  ;;  %s1684_s16 = scalar_lea.hbm %s2120_s5, 512 }
 0x27e   : > { %p1681_p13 = scmp.ne.s32.totalorder %s2035_s10, %s1680_s29  ;;  %p1685_p4 = scmp.lt.u32.totalorder %s2035_s10, %s2120_s5 }
 0x27f   : > { %p1686_p5 = scmp.lt.u32.totalorder %s1684_s16, %s1680_s29  ;;  %p1688_p11 = scmp.lt.u32.totalorder %s1680_s29, %s2035_s10 }
 0x280   : > { %p1682_p6 = pnand %p1681_p13, %p2135_p0 }
 0x281   : > { %p1687_p8 = por %p1686_p5, %p1685_p4 }
 0x282   : > { %p1683_p10 = pneg %p1682_p6 }
 0x283   : > { %p1689_p2 = por %p1688_p11, %p1687_p8 }
 0x285   : > { %p1690_p3 = pnand %p1689_p2, %p1683_p10 }
 0x287   : > { %1693 = shalt.err (!%p1690_p3)
}
 0x288   : > { %s1777_s7 = smov 128   ;;  %s1778_s14 = smov 8   ;;  %v906_v11 = vld [vmem:[%s2028_s17] ss:$2 sm:$0xff]  ;;  %v1094_v12 = vld [vmem:[%s2028_s17 + $0x1] ss:$2 sm:$0xff] }
 0x289   : > { %1512 = dma.vmem_to_hbm [thread:$0]  (%p2135_p0), %s2038_s26, 256, %s2035_s10, %s917_s15, %s1777_s7, %s1777_s7, %s1778_s14   ;;  %v909_v13 = vmax.f32 %v906_v11, %v1094_v12 }
 0x28a   : > { %s1779_s18 = smov 120   ;;  %s1085_s27 = sshll.u32 %s1997_s30, 3 }
 0x28b   : > { %911 = vrot.lane.b32.xlu0 %v909_v13, %s1779_s18  ;;  %s1099_s29 = sshll.u32 %s1837_s25, 7  ;;  %s309_s19 = scalar_lea.vmem [#allocation11], %s1085_s27 }
 0x28c   : > { %s951_s20 = sshll.u32 %s309_s19, 4  ;;  %s2071_s13 = scalar_lea.hbm %s2121_s6, %s1099_s29  ;;  %s2073_s20 = int_to_ptr.vmem [resolvable:$true] %s951_s20 }
 0x28d   : > { %s922_s17 = scalar_lea.sflag [#allocation12], %s1997_s30  ;;  %s1694_s26 = scalar_lea.vmem %s2073_s20, 128 }
 0x28e   : > { %p1695_p7 = scmp.ne.s32.totalorder %s2073_s20, %s1694_s26  ;;  %s1780_s25 = smov [#allocation11]  }
 0x28f   : > { %s1698_s10 = sshll.u32 %s1780_s25, 4  ;;  %s1699_s10 = int_to_ptr.vmem [resolvable:$false] %s1698_s10 }
 0x290   : > { %p1696_p9 = pnand %p1695_p7, %p2135_p0  ;;  %s1700_s15 = scalar_lea.vmem %s1699_s10, 256 }
 0x291   : > { %p1701_p1 = scmp.lt.s32.totalorder %s2073_s20, %s1699_s10  ;;  %p1702_p13 = scmp.lt.s32.totalorder %s1700_s15, %s1694_s26 }
 0x292   : > { %p1697_p12 = pneg %p1696_p9 }
 0x293   : > { %p1703_p6 = por %p1702_p13, %p1701_p1 }
 0x295   : > { %p1704_p10 = pnand %p1703_p6, %p1697_p12 }
 0x2fd   : > { %v912_v14 = vpop.permute.xlu0 %911 }
 0x2fe   : > { %v914_v15 = vmax.f32 %v909_v13, %v912_v14 }
 0x300   : > { %915 = vst [vmem:[%s309_s19] sm:$0xff] %v914_v15 }
 0x301   : > { %1707 = shalt.err (!%p1704_p10)
}
 0x302   : > { %s1708_s30 = scalar_lea.hbm %s2071_s13, 128  ;;  %s1712_s18 = scalar_lea.hbm %s2121_s6, 256 }
 0x303   : > { %p1709_p4 = scmp.ne.s32.totalorder %s2071_s13, %s1708_s30  ;;  %p1713_p11 = scmp.lt.u32.totalorder %s2071_s13, %s2121_s6 }
 0x304   : > { %p1714_p2 = scmp.lt.u32.totalorder %s1712_s18, %s1708_s30  ;;  %p1716_p7 = scmp.lt.u32.totalorder %s1708_s30, %s2071_s13 }
 0x305   : > { %p1710_p5 = pnand %p1709_p4, %p2135_p0 }
 0x306   : > { %p1715_p3 = por %p1714_p2, %p1713_p11 }
 0x307   : > { %p1711_p8 = pneg %p1710_p5 }
 0x308   : > { %p1717_p9 = por %p1716_p7, %p1715_p3 }
 0x30a   : > { %p1718_p12 = pnand %p1717_p9, %p1711_p8 }
 0x30c   : > { %1721 = shalt.err (!%p1718_p12)
}
 0x30d   : > { %1513 = dma.vmem_to_hbm [thread:$0]  (%p2135_p0), %s2073_s20, 128, %s2071_s13, %s922_s17  }
 0x30e PF: > { %s963_s19 = sand.u32 1, %s1756_s21   ;;  %p2136_p1 = scmp.ne.s32.totalorder %s2126_s28, 0 }
 0x30f   : > { %p2137_p13 = scmp.ge.s32.totalorder %s1768_s24, 2  ;;  %s964_s16 = scalar_lea.sflag [#allocation6], %s963_s19 }
 0x311   : > { %p1528_p6 = pnand %p2137_p13, %p2136_p1 }
 0x313   : > { %1747 = dma.done.wait (!%p1528_p6), %s964_s16, 256  }
 0x314   : > { %1749 = vsyncadd (!%p1528_p6), %s964_s16, 4294967040  ;;  %s973_s12 = scalar_lea.sflag [#allocation12], %s963_s19 }
 0x315   : > { %1751 = dma.done.wait (!%p1528_p6), %s973_s12, 128  }
 0x316   : > { %1753 = vsyncadd (!%p1528_p6), %s973_s12, 4294967168  ;;  %p24_p0 = scmp.ge.s32.totalorder %s1932_s8, 4   ;;  %s2138_s21 = smov %s1760_s22 }
 0x317   : > { %s2139_s22 = smov %s1764_s23  ;;  %s2140_s23 = smov %s1948_s11 }
 0x318   : > { %s2141_s24 = smov %s1932_s8  ;;  %26 = sbr.rel (!%p24_p0) target bundleno = 8 (0x8), region = 115 }
 0x31f   :  { %978 = vsyncpa [#allocation5], 1 }
 0x320   :  { %980 = vsyncpa [#allocation5 + $0x1], 1 }
 0x321   :  { %981 = vsyncpa [#allocation8], 1 }
 0x322   :  { %982 = vsyncpa [#allocation6], 1 }
 0x323   :  { %984 = vsyncpa [#allocation6 + $0x1], 1 }
 0x324   :  { %985 = vsyncpa [#allocation12], 1 }
 0x325   :  { %987 = vsyncpa [#allocation12 + $0x1], 1 }

</bundles_post_ra>
